<compile_context>
chip_gen: v6e
topology: v6e:2x2x1
jax: 0.10.0
libtpu: 0.0.40
codegen_flags: <defaults>
</compile_context>

<pallas_src>
import functools

import jax
import jax.numpy as jnp
import numpy as np
from jax.experimental import pallas as pl
from jax.experimental.pallas import tpu as pltpu


def _round_up(x, m):
    return ((x + m - 1) // m) * m


def _pad2d(a, rows, cols):
    pr = rows - a.shape[0]
    pc = cols - a.shape[1]
    if pr or pc:
        a = jnp.pad(a, ((0, pr), (0, pc)))
    return a


# ----------------------------------------------------------------------------
# Pallas kernel
# ----------------------------------------------------------------------------
def _nig_conv_kernel(adj_ref, h_ref, invdeg_ref, xdst_ref, wn_ref, ws_ref,
                     b_ref, out_ref, acc_ref, *, lin_before_mp):
    k = pl.program_id(1)

    @pl.when(k == 0)
    def _init():
        acc_ref[...] = jnp.zeros_like(acc_ref)

    # Partial (mean-numerator) aggregation over this K slab: bf16 x bf16 -> f32.
    acc_ref[...] += jnp.dot(adj_ref[...], h_ref[...],
                            preferred_element_type=jnp.float32)

    @pl.when(k == pl.num_programs(1) - 1)
    def _finalize():
        # fn.mean: divide by in-degree (inv_deg == 0 for isolated dst nodes).
        agg = acc_ref[...] * invdeg_ref[...]                  # (TM, F_agg) f32
        if lin_before_mp:
            neigh = agg   # projection already hoisted to the wrapper
        else:
            neigh = jnp.dot(agg.astype(jnp.bfloat16), wn_ref[...],
                            preferred_element_type=jnp.float32)
        self_t = jnp.dot(xdst_ref[...], ws_ref[...],
                         preferred_element_type=jnp.float32)
        out_ref[...] = (self_t + neigh + b_ref[...]).astype(out_ref.dtype)


# ----------------------------------------------------------------------------
# Wrapper
# ----------------------------------------------------------------------------
def nig_conv(x_src, x_dst, adj_w, inv_deg, w_neigh_t, w_self_t, bias,
             *, tile_m=256, tile_k=512):
    """NIGConv forward.

    x_src:     (N_src, Fin)   source node features (feat_drop p=0 -> identity)
    x_dst:     (N_dst, Fin)   destination node features
    adj_w:     (N_dst, N_src) weighted dense adjacency (edge weights folded in)
    inv_deg:   (N_dst, 1)     1 / in-degree (0 where degree == 0)
    w_neigh_t: (Fin, Fout)    fc_neigh weight, transposed
    w_self_t:  (Fin, Fout)    fc_self weight, transposed
    bias:      (1, Fout)
    """
    n_dst, n_src = adj_w.shape
    fin = x_src.shape[1]
    fout = w_neigh_t.shape[1]
    lin_before_mp = fin > fout   # static: decided at module-init time

    # Lane-dense feature dims (avoid masked partial stores on the output).
    fin_p = _round_up(fin, 128)
    fout_p = _round_up(fout, 128)

    # Clamp tiles to the (padded) problem, keep (8, 128) alignment.
    tile_m = min(tile_m, _round_up(n_dst, 8))
    tile_k = min(tile_k, _round_up(n_src, 128))
    n_dst_p = _round_up(n_dst, tile_m)
    n_src_p = _round_up(n_src, tile_k)

    # Pad + cast.  adj_w and the streamed aggregation input dominate HBM
    # traffic -> bf16 (accumulation stays f32 inside the kernel).
    adj_p = _pad2d(adj_w, n_dst_p, n_src_p).astype(jnp.bfloat16)
    invdeg_p = _pad2d(inv_deg, n_dst_p, 1).astype(jnp.float32)
    xdst_p = _pad2d(x_dst, n_dst_p, fin_p).astype(jnp.bfloat16)
    wn_p = _pad2d(w_neigh_t, fin_p, fout_p).astype(jnp.bfloat16)
    ws_p = _pad2d(w_self_t, fin_p, fout_p).astype(jnp.bfloat16)
    bias_p = _pad2d(bias, 1, fout_p).astype(jnp.float32)

    if lin_before_mp:
        # Hoist the grid-invariant projection out of the kernel: compute
        # x_src @ W_neigh once, stream the (N_src, Fout) result instead of
        # re-projecting every grid step.
        h_agg = jnp.dot(x_src, w_neigh_t, preferred_element_type=jnp.float32)
        h_agg = _pad2d(h_agg, n_src_p, fout_p).astype(jnp.bfloat16)
        f_agg = fout_p
    else:
        h_agg = _pad2d(x_src, n_src_p, fin_p).astype(jnp.bfloat16)
        f_agg = fin_p

    grid = (n_dst_p // tile_m, n_src_p // tile_k)

    # Advisory cost estimate (dominant: aggregation matmul + adj_w stream).
    flops = 2 * n_dst_p * n_src_p * f_agg + 2 * n_dst_p * fin_p * fout_p
    if not lin_before_mp:
        flops += 2 * n_dst_p * fin_p * fout_p
    bytes_accessed = (adj_p.size * 2 + grid[0] * h_agg.size * 2
                      + xdst_p.size * 2 + wn_p.size * 2 + ws_p.size * 2
                      + invdeg_p.size * 4 + n_dst_p * fout_p * 4)

    # Explicit VMEM budget (double-buffered streams + resident blocks + acc),
    # clamped so it stays within v7x's 64 MiB physical VMEM.
    vmem_est = (2 * tile_m * tile_k * 2          # adj (bf16, double-buffered)
                + 2 * tile_k * f_agg * 2         # aggregation input stream
                + 2 * tile_m * fin_p * 2         # x_dst
                + 2 * 2 * fin_p * fout_p * 2     # weights
                + 2 * fout_p * 4                 # bias
                + 2 * tile_m * fout_p * 4        # output
                + 2 * tile_m * 4                 # inv_deg
                + tile_m * f_agg * 4)            # accumulator scratch
    vmem_limit = int(min(64 * 1024 * 1024,
                         max(32 * 1024 * 1024, 2 * vmem_est)))

    kernel = functools.partial(_nig_conv_kernel, lin_before_mp=lin_before_mp)

    out_p = pl.pallas_call(
        kernel,
        out_shape=jax.ShapeDtypeStruct((n_dst_p, fout_p), jnp.float32),
        grid_spec=pltpu.PrefetchScalarGridSpec(
            num_scalar_prefetch=0,
            grid=grid,
            in_specs=[
                pl.BlockSpec((tile_m, tile_k), lambda i, k: (i, k)),  # adj
                pl.BlockSpec((tile_k, f_agg), lambda i, k: (k, 0)),   # agg input
                pl.BlockSpec((tile_m, 1), lambda i, k: (i, 0)),       # inv_deg
                pl.BlockSpec((tile_m, fin_p), lambda i, k: (i, 0)),   # x_dst
                pl.BlockSpec((fin_p, fout_p), lambda i, k: (0, 0)),   # W_neigh^T
                pl.BlockSpec((fin_p, fout_p), lambda i, k: (0, 0)),   # W_self^T
                pl.BlockSpec((1, fout_p), lambda i, k: (0, 0)),       # bias
            ],
            out_specs=pl.BlockSpec((tile_m, fout_p), lambda i, k: (i, 0)),
            scratch_shapes=[pltpu.VMEM((tile_m, f_agg), jnp.float32)],
        ),
        compiler_params=pltpu.CompilerParams(
            dimension_semantics=("parallel", "arbitrary"),
            vmem_limit_bytes=vmem_limit),
        cost_estimate=pl.CostEstimate(
            flops=int(flops), transcendentals=0,
            bytes_accessed=int(bytes_accessed)),
    )(adj_p, h_agg, invdeg_p, xdst_p, wn_p, ws_p, bias_p)

    return out_p[:n_dst, :fout]


# ----------------------------------------------------------------------------
# Plain-JAX reference (mirrors the kernel's bf16 rounding points)
# ----------------------------------------------------------------------------
def nig_conv_reference(x_src, x_dst, adj_w, inv_deg, w_neigh_t, w_self_t, bias):
    f32, bf16 = jnp.float32, jnp.bfloat16
    lin_before_mp = x_src.shape[1] > w_neigh_t.shape[1]
    adj_r = adj_w.astype(bf16).astype(f32)
    if lin_before_mp:
        h = jnp.dot(x_src, w_neigh_t, preferred_element_type=f32)
        h_r = h.astype(bf16).astype(f32)
        neigh = jnp.dot(adj_r, h_r, preferred_element_type=f32) * inv_deg
    else:
        h_r = x_src.astype(bf16).astype(f32)
        agg = jnp.dot(adj_r, h_r, preferred_element_type=f32) * inv_deg
        neigh = jnp.dot(agg.astype(bf16).astype(f32),
                        w_neigh_t.astype(bf16).astype(f32),
                        preferred_element_type=f32)
    self_t = jnp.dot(x_dst.astype(bf16).astype(f32),
                     w_self_t.astype(bf16).astype(f32),
                     preferred_element_type=f32)
    return self_t + neigh + bias


# ----------------------------------------------------------------------------
# Deterministic parameter init (nn.init.xavier_uniform_ with relu gain)
# ----------------------------------------------------------------------------
def xavier_uniform_t(key, out_feats, in_feats, gain):
    a = gain * np.sqrt(6.0 / (in_feats + out_feats))
    # torch Linear weight is (out, in); return the transpose (in, out).
    w = jax.random.uniform(key, (out_feats, in_feats), jnp.float32, -a, a)
    return w.T


def _run_case(key, n_src, n_dst, in_feats, out_feats, use_edge_weight,
              tile_m, tile_k):
    k_feat, k_adj, k_ew, k_wn, k_ws = jax.random.split(key, 5)

    # Node features; feat_drop = 0.0 so dropout is the identity.
    feat_src = jax.random.normal(k_feat, (n_src, in_feats), jnp.float32)
    feat_dst = feat_src[:n_dst]      # block-graph style: dst = first n_dst src

    # Random sparse-ish graph as a dense adjacency (dst x src).
    adj = (jax.random.uniform(k_adj, (n_dst, n_src)) < 0.1).astype(jnp.float32)
    if use_edge_weight:
        ew = jax.random.uniform(k_ew, (n_dst, n_src), jnp.float32, 0.5, 1.5)
        adj_w = adj * ew             # u_mul_e('h', '_edge_weight')
    else:
        adj_w = adj                  # copy_src('h', 'm')
    deg = jnp.sum(adj, axis=1, keepdims=True)                       # in-degree
    inv_deg = jnp.where(deg > 0, 1.0 / jnp.maximum(deg, 1.0), 0.0)  # fn.mean

    gain = float(np.sqrt(2.0))       # nn.init.calculate_gain('relu')
    w_neigh_t = xavier_uniform_t(k_wn, out_feats, in_feats, gain)   # (Fin, Fout)
    w_self_t = xavier_uniform_t(k_ws, out_feats, in_feats, gain)    # (Fin, Fout)
    bias = jnp.zeros((1, out_feats), jnp.float32)

    out = nig_conv(feat_src, feat_dst, adj_w, inv_deg,
                   w_neigh_t, w_self_t, bias, tile_m=tile_m, tile_k=tile_k)
    out = jax.block_until_ready(out)

    ref = nig_conv_reference(feat_src, feat_dst, adj_w, inv_deg,
                             w_neigh_t, w_self_t, bias)
    np.testing.assert_allclose(np.asarray(out), np.asarray(ref),
                               rtol=5e-3, atol=5e-3)


if __name__ == "__main__":
    root = jax.random.PRNGKey(0)
    k1, k2 = jax.random.split(root)

    # in <= out -> aggregate-then-project; small tiles force a (2, 2) grid so
    # the K accumulator + epilogue path is exercised.
    _run_case(k1, n_src=256, n_dst=128, in_feats=32, out_feats=64,
              use_edge_weight=True, tile_m=64, tile_k=128)

    # in > out -> project-then-aggregate (hoisted projection), ragged sizes
    # exercise the padding path; default-style larger tiles get clamped.
    _run_case(k2, n_src=192, n_dst=96, in_feats=64, out_feats=32,
              use_edge_weight=False, tile_m=256, tile_k=512)

    print("KERNEL_OK")
</pallas_src>

<mosaic_0001>
module attributes {stable_mosaic.version = 11 : i64} {
  func.func @_nig_conv_kernel(%arg0: i32, %arg1: i32, %arg2: memref<64x128xbf16, #tpu.memory_space<vmem>>, %arg3: memref<128x128xbf16, #tpu.memory_space<vmem>>, %arg4: memref<64x1xf32, #tpu.memory_space<vmem>>, %arg5: memref<64x128xbf16, #tpu.memory_space<vmem>>, %arg6: memref<128x128xbf16, #tpu.memory_space<vmem>>, %arg7: memref<128x128xbf16, #tpu.memory_space<vmem>>, %arg8: memref<1x128xf32, #tpu.memory_space<vmem>>, %arg9: memref<64x128xf32, #tpu.memory_space<vmem>>, %arg10: memref<64x128xf32, #tpu.memory_space<vmem>>) attributes {dimension_semantics = [#tpu.dimension_semantics<parallel>, #tpu.dimension_semantics<arbitrary>], iteration_bounds = array<i64: 2, 2>, scalar_prefetch = 0 : i64, scratch_operands = 1 : i64, tpu.core_type = #tpu.core_type<tc>, window_params = [{transform_indices = @transform_0, window_bounds = array<i64: 64, 128>}, {transform_indices = @transform_1, window_bounds = array<i64: 128, 128>}, {transform_indices = @transform_2, window_bounds = array<i64: 64, 1>}, {transform_indices = @transform_3, window_bounds = array<i64: 64, 128>}, {pipeline_mode = #tpu.pipeline_mode<synchronous>, transform_indices = @transform_4, window_bounds = array<i64: 128, 128>}, {pipeline_mode = #tpu.pipeline_mode<synchronous>, transform_indices = @transform_5, window_bounds = array<i64: 128, 128>}, {pipeline_mode = #tpu.pipeline_mode<synchronous>, transform_indices = @transform_6, window_bounds = array<i64: 1, 128>}, {transform_indices = @transform_7, window_bounds = array<i64: 64, 128>}]} {
    %c0_i32 = arith.constant 0 : i32
    %0 = arith.cmpi eq, %arg1, %c0_i32 : i32
    %1 = arith.extui %0 : i1 to i32
    %c0_i32_0 = arith.constant 0 : i32
    %2 = arith.cmpi ne, %1, %c0_i32_0 : i32
    scf.if %2 {
      %cst_9 = arith.constant 0.000000e+00 : f32
      %12 = vector.broadcast %cst_9 : f32 to vector<64x128xf32>
      %c0_10 = arith.constant 0 : index
      %c0_11 = arith.constant 0 : index
      %13 = vector.load %arg10[%c0_10, %c0_11] : memref<64x128xf32, #tpu.memory_space<vmem>>, vector<64x128xf32>
      tpu.vector_store %arg10[%c0_10, %c0_11], %12 {strides = array<i32>} : memref<64x128xf32, #tpu.memory_space<vmem>>, vector<64x128xf32>,
    } else {
    }
    %c0 = arith.constant 0 : index
    %c0_1 = arith.constant 0 : index
    %3 = vector.load %arg10[%c0, %c0_1] : memref<64x128xf32, #tpu.memory_space<vmem>>, vector<64x128xf32>
    %c0_2 = arith.constant 0 : index
    %c0_3 = arith.constant 0 : index
    %4 = vector.load %arg2[%c0_2, %c0_3] : memref<64x128xbf16, #tpu.memory_space<vmem>>, vector<64x128xbf16>
    %c0_4 = arith.constant 0 : index
    %c0_5 = arith.constant 0 : index
    %5 = vector.load %arg3[%c0_4, %c0_5] : memref<128x128xbf16, #tpu.memory_space<vmem>>, vector<128x128xbf16>
    %cst = arith.constant dense<0.000000e+00> : vector<64x128xf32>
    %6 = tpu.matmul %4, %5, %cst {dimension_numbers = #tpu.dot_dimension_numbers<[1], [0], [0], [1], [0, 0, 1, 1], [], []>} : vector<64x128xbf16>, vector<128x128xbf16>, vector<64x128xf32> -> vector<64x128xf32>
    %7 = arith.addf %3, %6 : vector<64x128xf32>
    %c0_6 = arith.constant 0 : index
    %c0_7 = arith.constant 0 : index
    %8 = vector.load %arg10[%c0_6, %c0_7] : memref<64x128xf32, #tpu.memory_space<vmem>>, vector<64x128xf32>
    tpu.vector_store %arg10[%c0_6, %c0_7], %7 {strides = array<i32>} : memref<64x128xf32, #tpu.memory_space<vmem>>, vector<64x128xf32>,
    %c1_i32 = arith.constant 1 : i32
    %9 = arith.cmpi eq, %arg1, %c1_i32 : i32
    %10 = arith.extui %9 : i1 to i32
    %c0_i32_8 = arith.constant 0 : i32
    %11 = arith.cmpi ne, %10, %c0_i32_8 : i32
    scf.if %11 {
      %c0_9 = arith.constant 0 : index
      %c0_10 = arith.constant 0 : index
      %12 = vector.load %arg10[%c0_9, %c0_10] : memref<64x128xf32, #tpu.memory_space<vmem>>, vector<64x128xf32>
      %c0_11 = arith.constant 0 : index
      %c0_12 = arith.constant 0 : index
      %13 = vector.load %arg4[%c0_11, %c0_12] : memref<64x1xf32, #tpu.memory_space<vmem>>, vector<64x1xf32>
      %14 = vector.broadcast %13 : vector<64x1xf32> to vector<64x128xf32>
      %15 = arith.mulf %12, %14 : vector<64x128xf32>
      %16 = arith.truncf %15 : vector<64x128xf32> to vector<64x128xbf16>
      %c0_13 = arith.constant 0 : index
      %c0_14 = arith.constant 0 : index
      %17 = vector.load %arg6[%c0_13, %c0_14] : memref<128x128xbf16, #tpu.memory_space<vmem>>, vector<128x128xbf16>
      %cst_15 = arith.constant dense<0.000000e+00> : vector<64x128xf32>
      %18 = tpu.matmul %16, %17, %cst_15 {dimension_numbers = #tpu.dot_dimension_numbers<[1], [0], [0], [1], [0, 0, 1, 1], [], []>} : vector<64x128xbf16>, vector<128x128xbf16>, vector<64x128xf32> -> vector<64x128xf32>
      %c0_16 = arith.constant 0 : index
      %c0_17 = arith.constant 0 : index
      %19 = vector.load %arg5[%c0_16, %c0_17] : memref<64x128xbf16, #tpu.memory_space<vmem>>, vector<64x128xbf16>
      %c0_18 = arith.constant 0 : index
      %c0_19 = arith.constant 0 : index
      %20 = vector.load %arg7[%c0_18, %c0_19] : memref<128x128xbf16, #tpu.memory_space<vmem>>, vector<128x128xbf16>
      %cst_20 = arith.constant dense<0.000000e+00> : vector<64x128xf32>
      %21 = tpu.matmul %19, %20, %cst_20 {dimension_numbers = #tpu.dot_dimension_numbers<[1], [0], [0], [1], [0, 0, 1, 1], [], []>} : vector<64x128xbf16>, vector<128x128xbf16>, vector<64x128xf32> -> vector<64x128xf32>
      %22 = arith.addf %21, %18 : vector<64x128xf32>
      %c0_21 = arith.constant 0 : index
      %c0_22 = arith.constant 0 : index
      %23 = vector.load %arg8[%c0_21, %c0_22] : memref<1x128xf32, #tpu.memory_space<vmem>>, vector<1x128xf32>
      %24 = vector.broadcast %23 : vector<1x128xf32> to vector<64x128xf32>
      %25 = arith.addf %22, %24 : vector<64x128xf32>
      %c0_23 = arith.constant 0 : index
      %c0_24 = arith.constant 0 : index
      %26 = vector.load %arg9[%c0_23, %c0_24] : memref<64x128xf32, #tpu.memory_space<vmem>>, vector<64x128xf32>
      tpu.vector_store %arg9[%c0_23, %c0_24], %25 {strides = array<i32>} : memref<64x128xf32, #tpu.memory_space<vmem>>, vector<64x128xf32>,
    } else {
    }
    return
  }
  func.func @transform_0(%arg0: i32, %arg1: i32) -> (i32, i32) {
    %c0_i32 = arith.constant 0 : i32
    return %arg0, %arg1 : i32, i32
  }
  func.func @transform_1(%arg0: i32, %arg1: i32) -> (i32, i32) {
    %c0_i32 = arith.constant 0 : i32
    %c0_i32_0 = arith.constant 0 : i32
    return %arg1, %c0_i32 : i32, i32
  }
  func.func @transform_2(%arg0: i32, %arg1: i32) -> (i32, i32) {
    %c0_i32 = arith.constant 0 : i32
    %c0_i32_0 = arith.constant 0 : i32
    return %arg0, %c0_i32 : i32, i32
  }
  func.func @transform_3(%arg0: i32, %arg1: i32) -> (i32, i32) {
    %c0_i32 = arith.constant 0 : i32
    %c0_i32_0 = arith.constant 0 : i32
    return %arg0, %c0_i32 : i32, i32
  }
  func.func @transform_4(%arg0: i32, %arg1: i32) -> (i32, i32) {
    %c0_i32 = arith.constant 0 : i32
    %c0_i32_0 = arith.constant 0 : i32
    %c0_i32_1 = arith.constant 0 : i32
    return %c0_i32, %c0_i32_0 : i32, i32
  }
  func.func @transform_5(%arg0: i32, %arg1: i32) -> (i32, i32) {
    %c0_i32 = arith.constant 0 : i32
    %c0_i32_0 = arith.constant 0 : i32
    %c0_i32_1 = arith.constant 0 : i32
    return %c0_i32, %c0_i32_0 : i32, i32
  }
  func.func @transform_6(%arg0: i32, %arg1: i32) -> (i32, i32) {
    %c0_i32 = arith.constant 0 : i32
    %c0_i32_0 = arith.constant 0 : i32
    %c0_i32_1 = arith.constant 0 : i32
    return %c0_i32, %c0_i32_0 : i32, i32
  }
  func.func @transform_7(%arg0: i32, %arg1: i32) -> (i32, i32) {
    %c0_i32 = arith.constant 0 : i32
    %c0_i32_0 = arith.constant 0 : i32
    return %arg0, %c0_i32 : i32, i32
  }
}

</mosaic_0001>

<bundles_post_ra>
// kernel: tpu_custom_call.1
= control target key start
LH: loop header
LB: loop body
LE: loop exit
PB: predicated region body
PF: predicated region fallthrough
CT: control target
= control target key end

     0   :  { %s2296_s0 = inlined_call_operand.vmem [shape: bf16[128,256], index: 0, kind: input, shape index: {}]   ;;  %s2297_s1 = inlined_call_operand.hbm [shape: bf16[256,128], index: 1, kind: input, shape index: {}]   ;;  %s2298_s2 = inlined_call_operand.vmem [shape: f32[128,1], index: 2, kind: input, shape index: {}]   ;;  %s2299_s3 = inlined_call_operand.hbm [shape: bf16[128,128], index: 3, kind: input, shape index: {}]   ;;  %s2300_s4 = inlined_call_operand.hbm [shape: bf16[128,128], index: 4, kind: input, shape index: {}]   ;;  %s2301_s5 = inlined_call_operand.hbm [shape: bf16[128,128], index: 5, kind: input, shape index: {}]   ;;  %s2302_s6 = inlined_call_operand.vmem [shape: f32[1,128], index: 6, kind: input, shape index: {}]   ;;  %s2303_s7 = inlined_call_operand.hbm [shape: f32[128,128], index: 7, kind: output, shape index: {}]  }
   0x1   :  { %2320 = sst [smem:[#allocation30_spill]] %s2296_s0 }
   0x2   :  { %2321 = sst [smem:[#allocation31_spill]] %s2297_s1 }
   0x3   :  { %2322 = sst [smem:[#allocation32_spill]] %s2298_s2 }
   0x4   :  { %2323 = sst [smem:[#allocation33_spill]] %s2300_s4 }
   0x5   :  { %2324 = sst [smem:[#allocation34_spill]] %s2301_s5 }
   0x6   :  { %2325 = sst [smem:[#allocation35_spill]] %s2302_s6 }
   0x7   :  { %2326 = sst [smem:[#allocation36_spill]] %s2303_s7 }
   0x8   :  { %12 = vsyncpa [#allocation5], 0 }
   0x9   :  { %14 = vsyncpa [#allocation5 + $0x1], 0 }
   0xa   :  { %15 = vsyncpa [#allocation8], 0 }
   0xb   :  { %17 = vsyncpa [#allocation8 + $0x1], 0 }
   0xc   :  { %18 = vsyncpa [#allocation11], 0 }
   0xd   :  { %19 = vsyncpa [#allocation6], 0 }
   0xe   :  { %21 = vsyncpa [#allocation6 + $0x1], 0  ;;  %s1933_s24 = smov 0   ;;  %s1935_s25 = smov 0  }
   0xf   :  { %s1937_s26 = smov 0   ;;  %s1939_s27 = smov 0  }
  0x10   :  { %s1941_s28 = smov 0   ;;  %s1943_s29 = smov 0  }
  0x11   :  { %s1945_s30 = smov 0   ;;  %s1947_s8 = smov 0  }
  0x12   :  { %s1949_s9 = smov 0   ;;  %s1951_s10 = smov 0  }
  0x13   :  { %s1953_s11 = smov 0   ;;  %s1955_s12 = smov 0  }
  0x14   :  { %s1957_s13 = smov 0  }
  0x15 LB: > { %2327 = sst [smem:[#allocation18_spill]] %s1830_s24  ;;  %s1999_s14 = sadd.s32 4294967295, %s1878_s13   ;;  %s1878_s13 = sphi %s1957_s13, %s27_s13   ;;  %s1874_s12 = sphi %s1955_s12, %s2395_s12   ;;  %s1870_s11 = sphi %s1953_s11, %s2394_s11   ;;  %s1866_s10 = sphi %s1951_s10, %s2393_s10   ;;  %s1862_s9 = sphi %s1949_s9, %s2392_s9   ;;  %s1858_s8 = sphi %s1947_s8, %s2391_s8   ;;  %s1854_s30 = sphi %s1945_s30, %s2390_s30   ;;  %s1850_s29 = sphi %s1943_s29, %s2389_s29   ;;  %s1846_s28 = sphi %s1941_s28, %s2388_s28   ;;  %s1842_s27 = sphi %s1939_s27, %s2387_s27   ;;  %s1838_s26 = sphi %s1937_s26, %s2386_s26   ;;  %s1834_s25 = sphi %s1935_s25, %s2385_s25   ;;  %s1830_s24 = sphi %s1933_s24, %s2378_s24  }
  0x16   : > { %2328 = sst [smem:[#allocation19_spill]] %s1834_s25  ;;  %s36_s16 = sadd.s32 1, %s1870_s11 }
  0x17   : > { %2329 = sst [smem:[#allocation20_spill]] %s1862_s9  ;;  %s39_s17 = sadd.s32 1, %s1874_s12 }
  0x18   : > { %2330 = sst [smem:[#allocation21_spill]] %s1866_s10  ;;  %p37_p0 = scmp.ge.s32.totalorder %s36_s16, 2 }
  0x19   : > { %s48_s18 = sadd.s32 1, %s1858_s8  ;;  %p55_p1 = scmp.ne.s32.totalorder %s1858_s8, %s1854_s30 }
  0x1a   : > { %p56_p2 = scmp.eq.s32.totalorder %s1878_s13, 0  ;;  %s2397_s16 = smov (%p37_p0, %s36_s16), 0 }
  0x1b   : > { %2331 = sst [smem:[#allocation22_spill]] %s2397_s16  ;;  %s2399_s17 = smov (!%p37_p0, %s39_s17), %s1874_s12 }
  0x1c   : > { %s44_s19 = ssub.s32 %s1870_s11, %s2397_s16  ;;  %p2015_p3 = por %p56_p2, %p55_p1 }
  0x1d   : > { %p41_p4 = scmp.ge.s32.totalorder %s2399_s17, 2  ;;  %p72_p5 = scmp.eq.s32.totalorder %s44_s19, 0 }
  0x1e   : > { %s74_s21 = sadd.s32 1, %s1850_s29  ;;  %p81_p6 = scmp.ne.s32.totalorder %s1850_s29, %s1846_s28 }
  0x1f   : > { %s2401_s17 = smov (%p41_p4, %s2399_s17), 0  ;;  %p87_p8 = scmp.ne.s32.totalorder %s1846_s28, %s1842_s27 }
  0x20   : > { %2333 = sst [smem:[#allocation23_spill]] %s2401_s17  ;;  %s43_s23 = ssub.s32 %s1874_s12, %s2401_s17 }
  0x21   : > { %s2025_s22 = scalar_select %p72_p5, %s1850_s29, %s74_s21  }
  0x22   : > { %p2031_p7 = por %p81_p6, %p56_p2  ;;  %s45_s16 = sor.u32 %s44_s19, %s43_s23 }
  0x23   : > { %2334 = sst [smem:[#allocation24_spill]] %s2025_s22  ;;  %p46_p9 = scmp.eq.s32.totalorder %s45_s16, 0 }
  0x24   : > { %p2308_p10 = scmp.eq.s32.totalorder %s1999_s14, 0  ;;  %p124_p11 = scmp.eq.s32.totalorder %s43_s23, 0 }
  0x25   : > { %s126_s7 = sadd.s32 1, %s1838_s26  ;;  %p133_p13 = scmp.ne.s32.totalorder %s1838_s26, %s1834_s25 }
  0x26   : > { %s2040_s6 = scalar_select %p46_p9, %s1858_s8, %s48_s18  }
  0x27   : > { %p2044_p12 = por %p2308_p10, %p87_p8  ;;  %p2055_p0 = por %p133_p13, %p56_p2 }
  0x28   : > { %2336 = sst [smem:[#allocation25_spill]] %s2040_s6  ;;  %p139_p1 = scmp.ne.s32.totalorder %s1834_s25, %s1830_s24 }
  0x29   : > { %s2337_s21 = scalar_select %p2044_p12, 1, 0 }
  0x2a   : > { %s2051_s17 = scalar_select %p124_p11, %s1838_s26, %s126_s7  }
  0x2b   : > { %s2339_s22 = scalar_select %p2055_p0, 1, 0 }
  0x2c   : > { %2338 = sst [smem:[#allocation26_spill]] %s2051_s17  ;;  %p226_p4 = scmp.eq.s32.totalorder %s1999_s14, 3 }
  0x2d   : > { %s2340_s27 = sadd.s32 4294967294, %s1878_s13   ;;  %p2066_p6 = por %p139_p1, %p2308_p10 }
  0x2e   : > { %p232_p5 = scmp.eq.s32.totalorder %s2340_s27, 3  ;;  %p1257_p8 = scmp.ge.s32.totalorder %s1878_s13, 1 }
  0x2f   : > { %s2341_s16 = scalar_select %p2066_p6, 1, 0 }
  0x30   : > { %p2071_p9 = por %p226_p4, %p133_p13  ;;  %p2075_p11 = por %p232_p5, %p139_p1 }
  0x31   : > { %2342 = sst [smem:[#allocation27_spill]] %s2341_s16  ;;  %p239_p2 = scmp.lt.s32.totalorder %s1878_s13, 5 }
  0x32   : > { %s2343_s18 = scalar_select %p2071_p9, 1, 0 }
  0x33   : > { %s2345_s7 = scalar_select %p2075_p11, 1, 0 }
  0x34   : > { %2344 = sst [smem:[#allocation28_spill]] %s2343_s18  ;;  %p2080_p12 = pnand %p1257_p8, %p239_p2 }
  0x35   : > { %2346 = sst [smem:[#allocation29_spill]] %s2345_s7  ;;  %s1880_s23 = smov [#allocation9]  }
  0x36   : > { %s2347_s19 = scalar_select %p2080_p12, 1, 0 }
  0x37   : > { %s251_s27 = sshll.u32 %s1880_s23, 4  ;;  %p1462_p10 = pneg %p2080_p12  ;;  %s252_s27 = int_to_ptr.vmem [resolvable:$true] %s251_s27 }
  0x38   : > { %s1881_s6 = smov [#allocation10]   ;;  %p2348_p13 = scmp.eq.s32.totalorder %s1999_s14, 0 }
  0x39   : > { %s264_s17 = sshll.u32 %s1881_s6, 4  ;;  %s1637_s7 = scalar_lea.vmem %s252_s27, 1024  ;;  %s265_s17 = int_to_ptr.vmem [resolvable:$true] %s264_s17 }
  0x3a   : > { %p2088_p4 = pnand %p1462_p10, %p2348_p13  ;;  %p1638_p5 = scmp.ne.s32.totalorder %s252_s27, %s1637_s7 }
  0x3b   : > { %p1645_p11 = scmp.lt.s32.totalorder %s252_s27, %s252_s27  ;;  %p1646_p9 = scmp.lt.s32.totalorder %s1637_s7, %s1637_s7 }
  0x3c   : > { %p1628_p1 = pneg %p2088_p4 }
  0x3d   : > { %p1647_p6 = por %p1646_p9, %p1645_p11 }
  0x3e   : > { %p1640_p8 = pnand %p1638_p5, %p1628_p1 }
  0x40   : > { %p1641_p2 = pneg %p1640_p8 }
  0x42   : > { %p1648_p12 = pnand %p1647_p6, %p1641_p2 }
  0x44   : > { %1651 = shalt.err (!%p1648_p12)
}
  0x45   : > { %s1882_s6 = smov 64   ;;  %s1883_s23 = smov 4  }
  0x46   : > { %s2350_s4 = sld [smem:[#allocation33_spill]]  ;;  %s1663_s2 = scalar_lea.vmem %s265_s17, 1024 }
  0x47   : > { %p1664_p10 = scmp.ne.s32.totalorder %s265_s17, %s1663_s2  ;;  %p1671_p8 = scmp.lt.s32.totalorder %s265_s17, %s265_s17 }
  0x48   : > { %p1672_p0 = scmp.lt.s32.totalorder %s1663_s2, %s1663_s2 }
  0x49   : > { %p1666_p13 = pnand %p1664_p10, %p1628_p1 }
  0x4a   : > { %p1673_p9 = por %p1672_p0, %p1671_p8 }
  0x4b   : > { %p1667_p5 = pneg %p1666_p13 }
  0x4c   : > { %1465 = dma.hbm_to_vmem [thread:$0]  (!%p2088_p4), %s2350_s4, 1024, %s252_s27, [#allocation8], %s1882_s6, %s1882_s6, %s1883_s23  }
  0x4d   : > { %p1674_p6 = pnand %p1673_p9, %p1667_p5 }
  0x4f   : > { %1677 = shalt.err (!%p1674_p6)
}
  0x50   : > { %s2351_s5 = sld [smem:[#allocation34_spill]]  ;;  %p1260_p12 = scmp.ge.s32.totalorder %s1878_s13, 4 }
  0x52   : > { %277 = sbr.rel (%p1260_p12) target bundleno = 134 (0x86), region = 28 }
  0x56   : > { %1468 = dma.hbm_to_vmem [thread:$0]  (!%p2088_p4), %s2351_s5, 1024, %s265_s17, [#allocation11], %s1882_s6, %s1882_s6, %s1883_s23  }
  0x57   : > { %280 = sbr.rel (!%p2015_p3) target bundleno = 102 (0x66), region = 32  ;;  %s282_s9 = sand.u32 (%p2015_p3), 1, %s1858_s8  }
  0x58   : > { %s1320_s2 = sshll.u32 (%p2015_p3), %s1874_s12, 4  ;;  %s1261_s18 = sshll.u32 (%p2015_p3), %s282_s9, 5 }
  0x59   : > { %s287_s27 = sadd.s32 (%p2015_p3), %s1870_s11, %s1320_s2  ;;  %s2352_s0 = sld [smem:[#allocation30_spill]] (%p2015_p3) }
  0x5a   : > { %s1264_s4 = sshll.u32 (%p2015_p3), %s287_s27, 2  ;;  %s284_s10 = scalar_lea.vmem (%p2015_p3), [#allocation3], %s1261_s18 }
  0x5f   : > { %s289_s25 = scalar_lea.vmem %s2352_s0, %s1264_s4 }
  0x60   : > { %v306_v0 = vld [vmem:[%s289_s25] sm:$0xf]  ;;  %v308_v1 = vld [vmem:[%s289_s25 + $0x8] sm:$0xf]  ;;  %v310_v2 = vld [vmem:[%s289_s25 + $0x10] sm:$0xf] }
  0x61   : > { %307 = vst [vmem:[%s284_s10] sm:$0xf] %v306_v0  ;;  %309 = vst [vmem:[%s284_s10 + $0x4] sm:$0xf] %v308_v1  ;;  %v312_v3 = vld [vmem:[%s289_s25 + $0x18] sm:$0xf] }
  0x62   : > { %311 = vst [vmem:[%s284_s10 + $0x8] sm:$0xf] %v310_v2  ;;  %v314_v4 = vld [vmem:[%s289_s25 + $0x20] sm:$0xf]  ;;  %v316_v5 = vld [vmem:[%s289_s25 + $0x28] sm:$0xf] }
  0x63   : > { %313 = vst [vmem:[%s284_s10 + $0xc] sm:$0xf] %v312_v3  ;;  %315 = vst [vmem:[%s284_s10 + $0x10] sm:$0xf] %v314_v4  ;;  %v318_v6 = vld [vmem:[%s289_s25 + $0x30] sm:$0xf] }
  0x64   : > { %317 = vst [vmem:[%s284_s10 + $0x14] sm:$0xf] %v316_v5  ;;  %v320_v7 = vld [vmem:[%s289_s25 + $0x38] sm:$0xf]  ;;  %319 = vst [vmem:[%s284_s10 + $0x18] sm:$0xf] %v318_v6 }
  0x65   : > { %321 = vst [vmem:[%s284_s10 + $0x1c] sm:$0xf] %v320_v7 }
  0x66 PF: > { %s362_s4 = sand.u32 1, %s1850_s29   ;;  %s1321_s17 = sshll.u32 %s1870_s11, 10 }
  0x67   : > { %s1265_s20 = sshll.u32 %s362_s4, 6  ;;  %s2353_s1 = sld [smem:[#allocation31_spill]] }
  0x68   : > { %s366_s7 = scalar_lea.vmem [#allocation4], %s1265_s20  ;;  %s363_s2 = scalar_lea.sflag [#allocation5], %s362_s4 }
  0x69   : > { %s373_s9 = sshll.u32 %s366_s7, 4  ;;  %s1884_s25 = smov [#allocation4]   ;;  %s374_s9 = int_to_ptr.vmem [resolvable:$true] %s373_s9 }
  0x6a   : > { %s1690_s18 = scalar_lea.vmem %s374_s9, 1024  ;;  %s1694_s27 = sshll.u32 %s1884_s25, 4  ;;  %s1695_s27 = int_to_ptr.vmem [resolvable:$false] %s1694_s27 }
  0x6b   : > { %p1691_p3 = scmp.ne.s32.totalorder %s374_s9, %s1690_s18  ;;  %s1696_s24 = scalar_lea.vmem %s1695_s27, 2048 }
  0x6c   : > { %p1697_p4 = scmp.lt.s32.totalorder %s374_s9, %s1695_s27  ;;  %p1698_p1 = scmp.lt.s32.totalorder %s1696_s24, %s1690_s18 }
  0x6d   : > { %s372_s23 = scalar_lea.hbm %s2353_s1, %s1321_s17  ;;  %p1692_p0 = pnand %p1691_p3, %p2031_p7 }
  0x6e   : > { %p1699_p2 = por %p1698_p1, %p1697_p4 }
  0x6f   : > { %p1693_p11 = pneg %p1692_p0 }
  0x71   : > { %p1700_p10 = pnand %p1699_p2, %p1693_p11 }
  0x73   : > { %1703 = shalt.err (!%p1700_p10)
}
  0x74   : > { %s1885_s10 = smov 64   ;;  %s1886_s4 = smov 4  }
  0x75   : > { %1452 = dma.hbm_to_vmem [thread:$0]  (%p2031_p7), %s372_s23, 1024, %s374_s9, %s363_s2, %s1885_s10, %s1885_s10, %s1886_s4  }
  0x76   : > { %s392_s17 = sand.u32 1, %s1878_s13   ;;  %s394_s20 = sand.u32 1, %s1838_s26  }
  0x77   : > { %s1268_s16 = sshll.u32 %s394_s20, 5  ;;  %s1322_s6 = sshll.u32 %s1874_s12, 9 }
  0x78   : > { %s402_s18 = scalar_lea.hbm %s2299_s3, %s1322_s6  ;;  %s396_s27 = scalar_lea.vmem [#allocation7], %s1268_s16 }
  0x79   : > { %s403_s24 = sshll.u32 %s396_s27, 4  ;;  %s393_s0 = scalar_lea.sflag [#allocation8], %s392_s17  ;;  %s404_s24 = int_to_ptr.vmem [resolvable:$true] %s403_s24 }
  0x7a   : > { %s1716_s1 = scalar_lea.vmem %s404_s24, 512  ;;  %p2354_p5 = scmp.ne.s32.totalorder %s2339_s22, 0 }
  0x7b   : > { %p1717_p13 = scmp.ne.s32.totalorder %s404_s24, %s1716_s1  ;;  %s1887_s5 = smov [#allocation7]  }
  0x7c   : > { %s1720_s15 = sshll.u32 %s1887_s5, 4  ;;  %s1721_s15 = int_to_ptr.vmem [resolvable:$false] %s1720_s15 }
  0x7d   : > { %p1718_p8 = pnand %p1717_p13, %p2354_p5  ;;  %s1722_s23 = scalar_lea.vmem %s1721_s15, 1024 }
  0x7e   : > { %p1723_p7 = scmp.lt.s32.totalorder %s404_s24, %s1721_s15  ;;  %p1724_p6 = scmp.lt.s32.totalorder %s1722_s23, %s1716_s1 }
  0x7f   : > { %p1719_p9 = pneg %p1718_p8 }
  0x80   : > { %p1725_p12 = por %p1724_p6, %p1723_p7 }
  0x82   : > { %p1726_p3 = pnand %p1725_p12, %p1719_p9 }
  0x84   : > { %1729 = shalt.err (!%p1726_p3)
}
  0x85   : > { %1453 = dma.hbm_to_vmem [thread:$0]  (%p2354_p5), %s402_s18, 512, %s404_s24, %s393_s0, %s1885_s10, %s1885_s10, %s1886_s4  }
  0x86 PF: > { %p2355_p0 = scmp.ne.s32.totalorder %s2347_s19, 0 }
  0x87   : > { %s418_s9 = sand.u32 (!%p2355_p0), 1, %s1854_s30   ;;  %s424_s2 = sand.u32 (!%p2355_p0), 1, %s1846_s28  }
  0x88   : > { %415 = sbr.rel (%p2355_p0) target bundleno = 788 (0x314), region = 85  ;;  %s1272_s5 = sshll.u32 (!%p2355_p0), %s418_s9, 5 }
  0x89   : > { %s1273_s17 = sshll.u32 (!%p2355_p0), %s424_s2, 6  ;;  %s2142_s20 = scalar_lea.vmem (!%p2355_p0), [#allocation3], %s1272_s5 }
  0x8a   : > { %s425_s1 = scalar_lea.sflag (!%p2355_p0), [#allocation5], %s424_s2  ;;  %s2144_s16 = scalar_lea.vmem (!%p2355_p0), [#allocation4], %s1273_s17 }
  0x8b   : > { %p2356_p11 = scmp.ne.s32.totalorder (!%p2355_p0), %s2337_s21, 0 }
  0x8d   : > { %1809 = dma.done.wait (%p2356_p11), %s425_s1, 1024  }
  0x8e   : > { %1811 = vsyncadd (%p2356_p11), %s425_s1, 4294966272  ;;  %s2357_s0 = sld [smem:[#allocation19_spill]]  ;;  %s433_s19 = sand.u32 1, %s1999_s14  }
  0x8f   : > { %s2358_s22 = sld [smem:[#allocation27_spill]]  ;;  %s434_s4 = scalar_lea.sflag [#allocation8], %s433_s19 }
  0x94   : > { %s2152_s10 = sand.u32 1, %s2357_s0  }
  0x95   : > { %s1274_s30 = sshll.u32 %s2152_s10, 5  ;;  %p2359_p4 = scmp.ne.s32.totalorder %s2358_s22, 0 }
  0x96   : > { %s2155_s6 = scalar_lea.vmem [#allocation7], %s1274_s30 }
  0x97   : > { %1813 = dma.done.wait (%p2359_p4), %s434_s4, 512  }
  0x98   : > { %1815 = vsyncadd (%p2359_p4), %s434_s4, 4294966784  ;;  %p2360_p1 = scmp.eq.s32.totalorder %s1999_s14, 0 }
  0x9a   : > { %1817 = dma.done.wait (%p2360_p1), [#allocation8], 1024   ;;  %p2361_p2 = pmov %p2360_p1 }
  0x9b   : > { %p2362_p10 = pmov %p2360_p1 }
  0x9c   : > { %1819 = vsyncadd (%p2361_p2), [#allocation8], 4294966272 }
  0x9d   : > { %1821 = dma.done.wait (%p2362_p10), [#allocation11], 1024   ;;  %p2363_p13 = pmov %p2360_p1 }
  0x9e   : > { %s2364_s21 = sld [smem:[#allocation21_spill]]  ;;  %s1277_s7 = sshll.u32 %s2152_s10, 6 }
  0x9f   : > { %1823 = vsyncadd (%p2363_p13), [#allocation11], 4294966272  ;;  %s2365_s15 = sld [smem:[#allocation32_spill]]  ;;  %s2176_s9 = scalar_lea.vmem [#allocation12], %s1277_s7 }
  0xa0   : > { %s2366_s2 = sld [smem:[#allocation20_spill]] }
  0xa4   : > { %s1278_s25 = sshll.u32 %s2364_s21, 3 }
  0xa5   : > { %p493_p5 = scmp.lt.s32.totalorder %s1278_s25, 15 }
  0xa6   : > { %p1280_p8 = scmp.ne.s32.totalorder %s2366_s2, 0 }
  0xa7   : > { %s2403_s25 = smov (!%p493_p5, %s1278_s25), 15 }
  0xa8   : > { %s1279_s18 = sshll.u32 %s2403_s25, 3  ;;  %504 = sbr.rel (%p1280_p8) target bundleno = 178 (0xb2), region = 109 }
  0xa9   : > { %s2174_s23 = scalar_lea.vmem %s2365_s15, %s1279_s18 }
  0xad   : > { %v1888_v8 = vmov 0.0  }
  0xae   : > { %505 = vst [vmem:[#allocation2 + $0x30] sm:$0xff] %v1888_v8  ;;  %506 = vst [vmem:[#allocation2] sm:$0xff] %v1888_v8 }
  0xaf   : > { %507 = vst [vmem:[#allocation2 + $0x18] sm:$0xff] %v1888_v8  ;;  %508 = vst [vmem:[#allocation2 + $0x10] sm:$0xff] %v1888_v8 }
  0xb0   : > { %509 = vst [vmem:[#allocation2 + $0x8] sm:$0xff] %v1888_v8  ;;  %510 = vst [vmem:[#allocation2 + $0x20] sm:$0xff] %v1888_v8 }
  0xb1   : > { %511 = vst [vmem:[#allocation2 + $0x28] sm:$0xff] %v1888_v8  ;;  %512 = vst [vmem:[#allocation2 + $0x38] sm:$0xff] %v1888_v8 }
  0xb2 PF: > { %v1592_v9 = vld [vmem:[%s2144_s16 + $0x38] sm:$0xff]   ;;  %v1593_v10 = vld [vmem:[%s2144_s16 + $0x30] sm:$0xff]   ;;  %v1594_v11 = vld [vmem:[%s2144_s16 + $0x28] sm:$0xff]   ;;  %s2367_s14 = sld [smem:[#allocation20_spill]] }
  0xb3   : > { %1360 = vmatprep.subr.bf16.mxu0 %v1592_v9  ;;  %1432 = vmatprep.subr.bf16.mxu1 %v1592_v9  ;;  %v1595_v12 = vld [vmem:[%s2144_s16 + $0x20] sm:$0xff]   ;;  %v1601_v14 = vld [vmem:[%s2142_s20 + $0x10] sm:$0xff]   ;;  %v1596_v15 = vld [vmem:[%s2144_s16 + $0x18] sm:$0xff]  }
  0xb4   : > { %1361 = vmatpush3.bf16.msra.mxu0 %v1592_v9  ;;  %1440 = vmatpush3.bf16.msra.mxu1 %v1592_v9  ;;  %v1600_v13 = vld [vmem:[%s2142_s20] sm:$0xff]   ;;  %v1597_v16 = vld [vmem:[%s2144_s16 + $0x10] sm:$0xff]   ;;  %v1598_v17 = vld [vmem:[%s2144_s16 + $0x8] sm:$0xff]  }
  0xb5   : > { %1362 = vmatprep.subr.bf16.mxu0 %v1593_v10  ;;  %1433 = vmatprep.subr.bf16.mxu1 %v1593_v10  ;;  %v1599_v18 = vld [vmem:[%s2144_s16] sm:$0xff]   ;;  %v1602_v19 = vld [vmem:[%s2142_s20 + $0x8] sm:$0xff]   ;;  %v1603_v20 = vld [vmem:[%s2142_s20 + $0x18] sm:$0xff]  }
  0xb6   : > { %1376 = vmatprep.mubr.bf16.mxu0 %v1600_v13  ;;  %1380 = vmatprep.mubr.bf16.mxu1 %v1601_v14  ;;  %v515_v21 = vld [vmem:[#allocation2 + $0x18] sm:$0xff]  ;;  %v513_v25 = vld [vmem:[#allocation2 + $0x30] sm:$0xff]  ;;  %v514_v37 = vld [vmem:[#allocation2] sm:$0xff] }
  0xb7   : > { %v517_v26 = vld [vmem:[#allocation2 + $0x8] sm:$0xff]  ;;  %v516_v31 = vld [vmem:[#allocation2 + $0x10] sm:$0xff]  ;;  %v518_v38 = vld [vmem:[#allocation2 + $0x20] sm:$0xff] }
  0xb8   : > { %1363 = vmatpush3.bf16.msra.mxu0 %v1593_v10  ;;  %1441 = vmatpush3.bf16.msra.mxu1 %v1593_v10  ;;  %v519_v22 = vld [vmem:[#allocation2 + $0x28] sm:$0xff]  ;;  %v520_v32 = vld [vmem:[#allocation2 + $0x38] sm:$0xff]  ;;  %p1293_p9 = scmp.ne.s32.totalorder %s2367_s14, 1 }
  0xb9   : > { %1364 = vmatprep.subr.bf16.mxu0 %v1594_v11  ;;  %1434 = vmatprep.subr.bf16.mxu1 %v1594_v11  ;;  %s2368_s20 = sld [smem:[#allocation35_spill]] (!%p1293_p9) }
  0xbc   : > { %1365 = vmatpush3.bf16.msra.mxu0 %v1594_v11  ;;  %1442 = vmatpush3.bf16.msra.mxu1 %v1594_v11 }
  0xbd   : > { %1366 = vmatprep.subr.bf16.mxu0 %v1595_v12  ;;  %1435 = vmatprep.subr.bf16.mxu1 %v1595_v12 }
  0xc0   : > { %1367 = vmatpush3.bf16.msra.mxu0 %v1595_v12  ;;  %1443 = vmatpush3.bf16.msra.mxu1 %v1595_v12 }
  0xc1   : > { %1368 = vmatprep.subr.bf16.mxu0 %v1596_v15  ;;  %1436 = vmatprep.subr.bf16.mxu1 %v1596_v15 }
  0xc4   : > { %1369 = vmatpush3.bf16.msra.mxu0 %v1596_v15  ;;  %1444 = vmatpush3.bf16.msra.mxu1 %v1596_v15 }
  0xc5   : > { %1370 = vmatprep.subr.bf16.mxu0 %v1597_v16  ;;  %1437 = vmatprep.subr.bf16.mxu1 %v1597_v16 }
  0xc8   : > { %1371 = vmatpush3.bf16.msra.mxu0 %v1597_v16  ;;  %1445 = vmatpush3.bf16.msra.mxu1 %v1597_v16 }
  0xc9   : > { %1372 = vmatprep.subr.bf16.mxu0 %v1598_v17  ;;  %1438 = vmatprep.subr.bf16.mxu1 %v1598_v17 }
  0xcc   : > { %1373 = vmatpush3.bf16.msra.mxu0 %v1598_v17  ;;  %1446 = vmatpush3.bf16.msra.mxu1 %v1598_v17 }
  0xcd   : > { %1374 = vmatprep.subr.bf16.mxu0 %v1599_v18  ;;  %1439 = vmatprep.subr.bf16.mxu1 %v1599_v18 }
  0xd0   : > { %1375 = vmatpush3.bf16.msra.mxu0 %v1599_v18  ;;  %1447 = vmatpush3.bf16.msra.mxu1 %v1599_v18 }
  0xd3   : > { %1377 = vmatmul.mubr.bf16.vlgmr.msra.gmra.mxu0 %v1602_v19  ;;  %1381 = vmatmul.mubr.bf16.vlgmr.msra.gmra.mxu1 %v1603_v20 }
 0x193   : > { %v1378_v23 = vpop.f32.mrf.mxu0  ;;  %v1382_v24 = vpop.f32.mrf.mxu1 }
 0x194   : > { %v684_v27 = vadd.f32 %v1378_v23, %v515_v21  ;;  %v688_v28 = vadd.f32 %v1382_v24, %v519_v22 }
 0x195   : > { %v651_v29 = vpop.f32.mrf.mxu0  ;;  %v667_v30 = vpop.f32.mrf.mxu1 }
 0x196   : > { %692 = vst [vmem:[#allocation2 + $0x18] sm:$0xff] %v684_v27  ;;  %696 = vst [vmem:[#allocation2 + $0x28] sm:$0xff] %v688_v28  ;;  %v682_v33 = vadd.f32 %v651_v29, %v513_v25  ;;  %v686_v34 = vadd.f32 %v667_v30, %v517_v26 }
 0x197   : > { %v1379_v35 = vpop.f32.mrf.mxu0  ;;  %v1383_v36 = vpop.f32.mrf.mxu1 }
 0x198   : > { %690 = vst [vmem:[#allocation2 + $0x30] sm:$0xff] %v682_v33  ;;  %694 = vst [vmem:[#allocation2 + $0x8] sm:$0xff] %v686_v34  ;;  %v685_v39 = vadd.f32 %v1379_v35, %v516_v31  ;;  %v689_v40 = vadd.f32 %v1383_v36, %v520_v32  ;;  %701 = sbr.rel (%p1293_p9) target bundleno = 760 (0x2f8), region = 113 }
 0x199   : > { %v654_v41 = vpop.f32.mrf.mxu0  ;;  %v670_v42 = vpop.f32.mrf.mxu1 }
 0x19a   : > { %693 = vst [vmem:[#allocation2 + $0x10] sm:$0xff] %v685_v39  ;;  %697 = vst [vmem:[#allocation2 + $0x38] sm:$0xff] %v689_v40  ;;  %v683_v43 = vadd.f32 %v654_v41, %v514_v37  ;;  %v687_v44 = vadd.f32 %v670_v42, %v518_v38 }
 0x19c   : > { %691 = vst [vmem:[#allocation2] sm:$0xff] %v683_v43  ;;  %695 = vst [vmem:[#allocation2 + $0x20] sm:$0xff] %v687_v44 }
 0x19d   : > { %v712_v45 = vld [vmem:[%s2174_s23 + $0x10] sm:$0xff]  ;;  %v710_v46 = vld [vmem:[%s2174_s23] sm:$0xff]  ;;  %v1889_v47 = vmov 0   ;;  %v713_v48 = vld [vmem:[%s2174_s23 + $0x18] sm:$0xff] }
 0x19e   : > { %1605 = vset.pattern.permute.xlu1 %v1889_v47  ;;  %1604 = vset.pattern.permute.xlu0 %v1889_v47  ;;  %v711_v49 = vld [vmem:[%s2174_s23 + $0x8] sm:$0xff]  ;;  %v1606_v50 = vld [vmem:[#allocation10 + $0x38] sm:$0xff]   ;;  %v1607_v51 = vld [vmem:[#allocation10 + $0x30] sm:$0xff]  }
 0x19f   : > { %730 = vperm.xlu1 %1605, %v712_v45   ;;  %720 = vperm.xlu0 %1604, %v710_v46   ;;  %v715_v52 = vld [vmem:[%s2174_s23 + $0x28] sm:$0xff]  ;;  %v1608_v53 = vld [vmem:[#allocation9 + $0x38] sm:$0xff]   ;;  %v714_v54 = vld [vmem:[%s2174_s23 + $0x20] sm:$0xff] }
 0x1a0   : > { %1408 = vmatprep.subr.bf16.mxu1 %v1606_v50  ;;  %1384 = vmatprep.subr.bf16.mxu0 %v1608_v53  ;;  %v1610_v55 = vld [vmem:[#allocation9 + $0x30] sm:$0xff]   ;;  %v1609_v56 = vld [vmem:[#allocation10 + $0x28] sm:$0xff]   ;;  %v717_v58 = vld [vmem:[%s2174_s23 + $0x38] sm:$0xff] }
 0x1a1   : > { %1409 = vmatpush3.bf16.msra.mxu1 %v1606_v50  ;;  %1385 = vmatpush3.bf16.msra.mxu0 %v1608_v53  ;;  %v1612_v57 = vld [vmem:[#allocation9 + $0x28] sm:$0xff]   ;;  %v716_v59 = vld [vmem:[%s2174_s23 + $0x30] sm:$0xff]  ;;  %v1611_v60 = vld [vmem:[#allocation10 + $0x20] sm:$0xff]  }
 0x1a2   : > { %1410 = vmatprep.subr.bf16.mxu1 %v1607_v51  ;;  %1386 = vmatprep.subr.bf16.mxu0 %v1610_v55  ;;  %v1614_v61 = vld [vmem:[#allocation9 + $0x20] sm:$0xff]   ;;  %v1613_v62 = vld [vmem:[#allocation10 + $0x18] sm:$0xff]   ;;  %v1615_v1 = vld [vmem:[#allocation10 + $0x10] sm:$0xff]  }
 0x1a3   : > { %735 = vperm.xlu1 %1605, %v713_v48   ;;  %725 = vperm.xlu0 %1604, %v711_v49   ;;  %v1616_v63 = vld [vmem:[#allocation9 + $0x18] sm:$0xff]   ;;  %v1621_v0 = vld [vmem:[%s2155_s6] sm:$0xff]   ;;  %v1618_v2 = vld [vmem:[#allocation9 + $0x10] sm:$0xff]  }
 0x1a4   : > { %1424 = vmatprep.mubr.bf16.mxu1 %v1621_v0  ;;  %v1617_v3 = vld [vmem:[#allocation10 + $0x8] sm:$0xff]   ;;  %v1619_v5 = vld [vmem:[#allocation10] sm:$0xff]   ;;  %v1624_v8 = vld [vmem:[%s2155_s6 + $0x10] sm:$0xff]  }
 0x1a5   : > { %1411 = vmatpush3.bf16.msra.mxu1 %v1607_v51  ;;  %1387 = vmatpush3.bf16.msra.mxu0 %v1610_v55  ;;  %v1620_v4 = vld [vmem:[#allocation9 + $0x8] sm:$0xff]   ;;  %v1623_v6 = vld [vmem:[#allocation9] sm:$0xff]   ;;  %v1625_v9 = vld [vmem:[%s2155_s6 + $0x18] sm:$0xff]  }
 0x1a6   : > { %1412 = vmatprep.subr.bf16.mxu1 %v1609_v56  ;;  %1388 = vmatprep.subr.bf16.mxu0 %v1612_v57  ;;  %v1622_v7 = vld [vmem:[%s2155_s6 + $0x8] sm:$0xff]   ;;  %v704_v12 = vld [vmem:[#allocation2 + $0x18] sm:$0xff]  ;;  %v702_v13 = vld [vmem:[#allocation2 + $0x30] sm:$0xff] }
 0x1a7   : > { %745 = vperm.xlu1 %1605, %v715_v52   ;;  %740 = vperm.xlu0 %1604, %v714_v54   ;;  %v705_v14 = vld [vmem:[#allocation2 + $0x10] sm:$0xff]  ;;  %v703_v15 = vld [vmem:[#allocation2] sm:$0xff]  ;;  %v706_v23 = vld [vmem:[#allocation2 + $0x8] sm:$0xff] }
 0x1a8   : > { %v707_v22 = vld [vmem:[#allocation2 + $0x20] sm:$0xff]  ;;  %v709_v30 = vld [vmem:[#allocation2 + $0x38] sm:$0xff]  ;;  %v708_v31 = vld [vmem:[#allocation2 + $0x28] sm:$0xff] }
 0x1a9   : > { %1413 = vmatpush3.bf16.msra.mxu1 %v1609_v56  ;;  %1389 = vmatpush3.bf16.msra.mxu0 %v1612_v57  ;;  %v1314_v43 = vld [vmem:[%s2368_s20] ss:$0 sm:$0xff] }
 0x1aa   : > { %1414 = vmatprep.subr.bf16.mxu1 %v1611_v60  ;;  %1390 = vmatprep.subr.bf16.mxu0 %v1614_v61 }
 0x1ab   : > { %755 = vperm.xlu1 %1605, %v717_v58   ;;  %750 = vperm.xlu0 %1604, %v716_v59  }
 0x1ad   : > { %1415 = vmatpush3.bf16.msra.mxu1 %v1611_v60  ;;  %1391 = vmatpush3.bf16.msra.mxu0 %v1614_v61 }
 0x1ae   : > { %1416 = vmatprep.subr.bf16.mxu1 %v1613_v62  ;;  %1392 = vmatprep.subr.bf16.mxu0 %v1616_v63 }
 0x1b1   : > { %1417 = vmatpush3.bf16.msra.mxu1 %v1613_v62  ;;  %1393 = vmatpush3.bf16.msra.mxu0 %v1616_v63 }
 0x1b2   : > { %1418 = vmatprep.subr.bf16.mxu1 %v1615_v1  ;;  %1394 = vmatprep.subr.bf16.mxu0 %v1618_v2 }
 0x1b5   : > { %1419 = vmatpush3.bf16.msra.mxu1 %v1615_v1  ;;  %1395 = vmatpush3.bf16.msra.mxu0 %v1618_v2 }
 0x1b6   : > { %1420 = vmatprep.subr.bf16.mxu1 %v1617_v3  ;;  %1396 = vmatprep.subr.bf16.mxu0 %v1620_v4 }
 0x1b9   : > { %1421 = vmatpush3.bf16.msra.mxu1 %v1617_v3  ;;  %1397 = vmatpush3.bf16.msra.mxu0 %v1620_v4 }
 0x1ba   : > { %1422 = vmatprep.subr.bf16.mxu1 %v1619_v5  ;;  %1398 = vmatprep.subr.bf16.mxu0 %v1623_v6 }
 0x1bd   : > { %1423 = vmatpush3.bf16.msra.mxu1 %v1619_v5  ;;  %1399 = vmatpush3.bf16.msra.mxu0 %v1623_v6 }
 0x1c0   : > { %1425 = vmatmul.mubr.bf16.vlgmr.msra.gmra.mxu1 %v1622_v7 }
 0x1c1   : > { %1428 = vmatprep.mubr.bf16.mxu1 %v1624_v8 }
 0x1c8   : > { %1429 = vmatmul.mubr.bf16.gmra.mxu1 %v1625_v9 }
 0x21a   : > { %v731_v10 = vpop.permute.xlu1 %730  ;;  %v721_v11 = vpop.permute.xlu0 %720 }
 0x21b   : > { %v760_v18 = vmul.f32 %v731_v10, %v704_v12  ;;  %v758_v19 = vmul.f32 %v721_v11, %v702_v13 }
 0x21e   : > { %v736_v16 = vpop.permute.xlu1 %735  ;;  %v726_v17 = vpop.permute.xlu0 %725 }
 0x21f   : > { %v761_v20 = vmul.f32 %v736_v16, %v705_v14  ;;  %v759_v21 = vmul.f32 %v726_v17, %v703_v15 }
 0x221   : > { %v767_v24 = vpack.c.bf16 %v761_v20, %v760_v18  ;;  %v766_v25 = vpack.c.bf16 %v759_v21, %v758_v19 }
 0x222   : > { %v746_v26 = vpop.permute.xlu1 %745  ;;  %v741_v27 = vpop.permute.xlu0 %740 }
 0x223   : > { %v763_v28 = vmul.f32 %v746_v26, %v707_v22  ;;  %v762_v29 = vmul.f32 %v741_v27, %v706_v23  ;;  %1400 = vmatprep.mubr.bf16.mxu0 %v766_v25 }
 0x224   : > { %1401 = vmatmul.mubr.bf16.vlgmr.msra.gmra.mxu0 %v767_v24 }
 0x225   : > { %v768_v32 = vpack.c.bf16 %v763_v28, %v762_v29 }
 0x226   : > { %v756_v33 = vpop.permute.xlu1 %755  ;;  %v751_v34 = vpop.permute.xlu0 %750 }
 0x227   : > { %v765_v35 = vmul.f32 %v756_v33, %v709_v30  ;;  %v764_v36 = vmul.f32 %v751_v34, %v708_v31  ;;  %1404 = vmatprep.mubr.bf16.mxu0 %v768_v32 }
 0x229   : > { %v769_v37 = vpack.c.bf16 %v765_v35, %v764_v36 }
 0x22c   : > { %1405 = vmatmul.mubr.bf16.gmra.mxu0 %v769_v37 }
 0x280   : > { %v1426_v38 = vpop.f32.mrf.mxu1 }
 0x282   : > { %v1029_v39 = vpop.f32.mrf.mxu1 }
 0x284   : > { %v1427_v40 = vpop.f32.mrf.mxu1 }
 0x286   : > { %v1032_v41 = vpop.f32.mrf.mxu1 }
 0x288   : > { %v1430_v46 = vpop.f32.mrf.mxu1 }
 0x28a   : > { %v1045_v52 = vpop.f32.mrf.mxu1 }
 0x28c   : > { %v1431_v59 = vpop.f32.mrf.mxu1 }
 0x28e   : > { %v1048_v2 = vpop.f32.mrf.mxu1 }
 0x2e4   : > { %v1402_v42 = vpop.f32.mrf.mxu0 }
 0x2e5   : > { %v1038_v44 = vadd.f32 %v1426_v38, %v1402_v42 }
 0x2e6   : > { %v868_v45 = vpop.f32.mrf.mxu0 }
 0x2e7   : > { %v1069_v47 = vadd.f32 %v1314_v43, %v1038_v44  ;;  %v1030_v48 = vadd.f32 %v1029_v39, %v868_v45 }
 0x2e8   : > { %v1403_v49 = vpop.f32.mrf.mxu0 }
 0x2e9   : > { %1077 = vst [vmem:[%s2176_s9 + $0x10] sm:$0xff] %v1069_v47  ;;  %v1067_v50 = vadd.f32 %v1314_v43, %v1030_v48  ;;  %v1041_v51 = vadd.f32 %v1427_v40, %v1403_v49 }
 0x2ea   : > { %v871_v53 = vpop.f32.mrf.mxu0 }
 0x2eb   : > { %1075 = vst [vmem:[%s2176_s9] sm:$0xff] %v1067_v50  ;;  %v1070_v54 = vadd.f32 %v1314_v43, %v1041_v51  ;;  %v1033_v55 = vadd.f32 %v1032_v41, %v871_v53 }
 0x2ec   : > { %v1406_v56 = vpop.f32.mrf.mxu0 }
 0x2ed   : > { %1078 = vst [vmem:[%s2176_s9 + $0x18] sm:$0xff] %v1070_v54  ;;  %v1068_v57 = vadd.f32 %v1314_v43, %v1033_v55  ;;  %v1054_v58 = vadd.f32 %v1430_v46, %v1406_v56 }
 0x2ee   : > { %v884_v60 = vpop.f32.mrf.mxu0 }
 0x2ef   : > { %1076 = vst [vmem:[%s2176_s9 + $0x8] sm:$0xff] %v1068_v57  ;;  %v1073_v61 = vadd.f32 %v1314_v43, %v1054_v58  ;;  %v1046_v62 = vadd.f32 %v1045_v52, %v884_v60 }
 0x2f0   : > { %v1407_v63 = vpop.f32.mrf.mxu0 }
 0x2f1   : > { %1081 = vst [vmem:[%s2176_s9 + $0x30] sm:$0xff] %v1073_v61  ;;  %v1071_v0 = vadd.f32 %v1314_v43, %v1046_v62  ;;  %v1057_v1 = vadd.f32 %v1431_v59, %v1407_v63 }
 0x2f2   : > { %v887_v3 = vpop.f32.mrf.mxu0 }
 0x2f3   : > { %1079 = vst [vmem:[%s2176_s9 + $0x20] sm:$0xff] %v1071_v0  ;;  %v1074_v4 = vadd.f32 %v1314_v43, %v1057_v1  ;;  %v1049_v5 = vadd.f32 %v1048_v2, %v887_v3 }
 0x2f5   : > { %1082 = vst [vmem:[%s2176_s9 + $0x38] sm:$0xff] %v1074_v4  ;;  %v1072_v6 = vadd.f32 %v1314_v43, %v1049_v5 }
 0x2f7   : > { %1080 = vst [vmem:[%s2176_s9 + $0x28] sm:$0xff] %v1072_v6 }
 0x2f8 PF: > { %s2369_s1 = sld [smem:[#allocation21_spill]]  ;;  %s1097_s21 = sshll.u32 %s2176_s9, 4  ;;  %s2222_s21 = int_to_ptr.vmem [resolvable:$true] %s1097_s21 }
 0x2f9   : > { %s2370_s16 = sld [smem:[#allocation28_spill]]  ;;  %s1084_s7 = scalar_lea.sflag [#allocation6], %s2152_s10 }
 0x2fa   : > { %s2371_s30 = sld [smem:[#allocation36_spill]]  ;;  %s1730_s25 = scalar_lea.vmem %s2222_s21, 1024 }
 0x2fb   : > { %p1731_p7 = scmp.ne.s32.totalorder %s2222_s21, %s1730_s25  ;;  %s1890_s18 = smov [#allocation12]  }
 0x2fc   : > { %s1734_s27 = sshll.u32 %s1890_s18, 4  ;;  %s1735_s27 = int_to_ptr.vmem [resolvable:$false] %s1734_s27 }
 0x2fd   : > { %s1736_s24 = scalar_lea.vmem %s1735_s27, 2048  ;;  %p1737_p0 = scmp.lt.s32.totalorder %s2222_s21, %s1735_s27 }
 0x2fe   : > { %s1323_s0 = sshll.u32 %s2369_s1, 10  ;;  %p1738_p11 = scmp.lt.s32.totalorder %s1736_s24, %s1730_s25 }
 0x2ff   : > { %p2373_p6 = scmp.ne.s32.totalorder %s2370_s16, 0 }
 0x300   : > { %s2372_s4 = smov %s2371_s30  ;;  %s2219_s6 = scalar_lea.hbm %s2371_s30, %s1323_s0 }
 0x301   : > { %p1732_p12 = pnand %p1731_p7, %p2373_p6  ;;  %p1739_p4 = por %p1738_p11, %p1737_p0 }
 0x303   : > { %p1733_p3 = pneg %p1732_p12 }
 0x305   : > { %p1740_p1 = pnand %p1739_p4, %p1733_p3 }
 0x307   : > { %1743 = shalt.err (!%p1740_p1)
}
 0x308   : > { %s1744_s15 = scalar_lea.hbm %s2219_s6, 1024  ;;  %s1748_s2 = scalar_lea.hbm %s2372_s4, 2048 }
 0x309   : > { %p1745_p2 = scmp.ne.s32.totalorder %s2219_s6, %s1744_s15  ;;  %p1749_p5 = scmp.lt.s32.totalorder %s2219_s6, %s2372_s4 }
 0x30a   : > { %p1750_p8 = scmp.lt.s32.totalorder %s1748_s2, %s1744_s15 }
 0x30b   : > { %p1746_p10 = pnand %p1745_p2, %p2373_p6 }
 0x30c   : > { %p1751_p9 = por %p1750_p8, %p1749_p5 }
 0x30d   : > { %p1747_p13 = pneg %p1746_p10 }
 0x30f   : > { %p1752_p7 = pnand %p1751_p9, %p1747_p13 }
 0x311   : > { %1755 = shalt.err (!%p1752_p7)
}
 0x312   : > { %s1891_s17 = smov 128   ;;  %s1892_s20 = smov 8  }
 0x313   : > { %1460 = dma.vmem_to_hbm [thread:$0]  (%p2373_p6), %s2222_s21, 1024, %s2219_s6, %s1084_s7, %s1891_s17, %s1891_s17, %s1892_s20  }
 0x314 PF: > { %s2374_s1 = sld [smem:[#allocation18_spill]]  ;;  %p1477_p12 = scmp.ge.s32.totalorder %s1878_s13, 2 }
 0x315   : > { %s2375_s0 = sld [smem:[#allocation29_spill]] }
 0x31a   : > { %s1112_s22 = sand.u32 1, %s2374_s1  }
 0x31b   : > { %p2376_p3 = scmp.ne.s32.totalorder %s2375_s0, 0  ;;  %s1113_s19 = scalar_lea.sflag [#allocation6], %s1112_s22 }
 0x31d   : > { %p1470_p0 = pnand %p1477_p12, %p2376_p3 }
 0x31f   : > { %p1471_p11 = pneg %p1470_p0 }
 0x321   : > { %1825 = dma.done.wait (%p1471_p11), %s1113_s19, 1024  }
 0x322   : > { %1827 = vsyncadd (%p1471_p11), %s1113_s19, 4294966272  ;;  %s27_s13 = sadd.s32 1, %s1878_s13   ;;  %s2378_s24 = sld [smem:[#allocation19_spill]] }
 0x323   : > { %p2252_p4 = scmp.ge.s32.totalorder %s27_s13, 6   ;;  %s2379_s10 = sld [smem:[#allocation26_spill]] }
 0x324   : > { %s2380_s16 = sld [smem:[#allocation24_spill]]  ;;  %s2385_s25 = smov %s1838_s26 }
 0x325   : > { %s2381_s6 = sld [smem:[#allocation25_spill]]  ;;  %s2387_s27 = smov %s1846_s28 }
 0x326   : > { %s2382_s21 = sld [smem:[#allocation22_spill]]  ;;  %s2388_s28 = smov %s1850_s29 }
 0x327   : > { %s2383_s7 = sld [smem:[#allocation23_spill]]  ;;  %s2390_s30 = smov %s1858_s8 }
 0x328   : > { %s2392_s9 = smov %s1870_s11 }
 0x329   : > { %s2386_s26 = smov %s2379_s10  ;;  %s2393_s10 = smov %s1874_s12 }
 0x32a   : > { %s2389_s29 = smov %s2380_s16  ;;  %26 = sbr.rel (!%p2252_p4) target bundleno = 21 (0x15), region = 174 }
 0x32b   : > { %s2391_s8 = smov %s2381_s6 }
 0x32c   : > { %s2394_s11 = smov %s2382_s21 }
 0x32d   : > { %s2395_s12 = smov %s2383_s7 }
 0x32f   :  { %1118 = vsyncpa [#allocation5], 1 }
 0x330   :  { %1120 = vsyncpa [#allocation5 + $0x1], 1 }
 0x331   :  { %1121 = vsyncpa [#allocation8], 1 }
 0x332   :  { %1123 = vsyncpa [#allocation8 + $0x1], 1 }
 0x333   :  { %1124 = vsyncpa [#allocation11], 1 }
 0x334   :  { %1125 = vsyncpa [#allocation6], 1 }
 0x335   :  { %1127 = vsyncpa [#allocation6 + $0x1], 1 }

</bundles_post_ra>
